<compile_context>
chip_gen: v5e
topology: v5e:2x2
jax: 0.10.0
libtpu: 0.0.40
codegen_flags: <defaults>
</compile_context>

<pallas_src>
import functools
import math

import jax
import jax.numpy as jnp
from jax.experimental import pallas as pl
from jax.experimental.pallas import tpu as pltpu


_VMEM_LIMIT = 32 * 1024 * 1024      # stay within v7x's 64 MiB physical VMEM


def _round_up(x, m):
    return (x + m - 1) // m * m


def _pick_tile(dim, candidates):
    for t in candidates:
        if dim % t == 0:
            return t
    return dim      # block dim == full array dim is always legal


# ---------------------------------------------------------------------------
# Kernel 1: single-pass matmul with fused bias (+ReLU).  bf16 MXU inputs,
# f32 accumulation, cast at the store.  Used for every 1x1 conv, the stride-2
# im2col convs, the layer4 centre-tap convs and the final fc.
# ---------------------------------------------------------------------------
def _matmul_bias_act_kernel(x_ref, w_ref, b_ref, o_ref, *, act):
    y = jnp.dot(x_ref[...], w_ref[...], preferred_element_type=jnp.float32)
    y = y + b_ref[...]
    if act == "relu":
        y = jnp.maximum(y, 0.0)
    o_ref[...] = y.astype(o_ref.dtype)


def matmul_bias_act(x, w, bias, act="none", out_dtype=jnp.bfloat16):
    """out[m, n] = act( x[m,:] @ w[:,n] + bias[n] );  single pass over K."""
    M, K = x.shape
    K2, N = w.shape
    assert K == K2
    tm = _pick_tile(M, (512, 256, 128))
    tn = _pick_tile(N, (256, 128))
    return pl.pallas_call(
        functools.partial(_matmul_bias_act_kernel, act=act),
        out_shape=jax.ShapeDtypeStruct((M, N), out_dtype),
        grid=(M // tm, N // tn),
        in_specs=[
            pl.BlockSpec((tm, K), lambda i, j: (i, 0)),
            pl.BlockSpec((K, tn), lambda i, j: (0, j)),
            pl.BlockSpec((1, tn), lambda i, j: (0, j)),
        ],
        out_specs=pl.BlockSpec((tm, tn), lambda i, j: (i, j)),
        compiler_params=pltpu.CompilerParams(
            dimension_semantics=("parallel", "parallel"),
            vmem_limit_bytes=_VMEM_LIMIT),
    )(x.astype(jnp.bfloat16), w, bias)


# ---------------------------------------------------------------------------
# Kernel 2: 3x3 stride-1 pad-1 conv, one whole sample (all channels) per grid
# step.  The padded (Hp, Wp, C) slab is resident in VMEM; the three W-shifted
# slabs are built once and reused for the 3 kh taps; accumulation is a value
# (no scratch-ref read-modify-write).  Grouped convs arrive here with dense
# block-diagonal weights, so there is no group handling at all.
# ---------------------------------------------------------------------------
def _conv3x3_s1_kernel(x_ref, w_ref, b_ref, o_ref, *, Ho, Wo, act):
    C = x_ref.shape[-1]
    # Three W-shifted views of the padded slab (kw = 0 is offset-0 / free).
    xw = [x_ref[0, :, kw:kw + Wo, :] for kw in range(3)]      # (Hp, Wo, C)
    acc = None
    for kh in range(3):
        for kw in range(3):
            xs = xw[kw][kh:kh + Ho].reshape(Ho * Wo, C)       # H slice is free
            t = kh * 3 + kw
            wk = w_ref[t * C:(t + 1) * C, :]
            d = jnp.dot(xs, wk, preferred_element_type=jnp.float32)
            acc = d if acc is None else acc + d
    y = acc + b_ref[...]
    if act == "relu":
        y = jnp.maximum(y, 0.0)
    o_ref[0] = y.astype(o_ref.dtype)


def conv3x3_s1(x, c):
    N, H, W, Cin = x.shape
    Cout = c["w"].shape[-1]
    xp = jnp.pad(x, ((0, 0), (1, 1), (1, 1), (0, 0)))
    Hp, Wp = H + 2, W + 2
    out = pl.pallas_call(
        functools.partial(_conv3x3_s1_kernel, Ho=H, Wo=W, act=c["act"]),
        out_shape=jax.ShapeDtypeStruct((N, H * W, Cout), jnp.bfloat16),
        grid=(N,),
        in_specs=[
            pl.BlockSpec((1, Hp, Wp, Cin), lambda n: (n, 0, 0, 0)),
            pl.BlockSpec((9 * Cin, Cout), lambda n: (0, 0)),
            pl.BlockSpec((1, Cout), lambda n: (0, 0)),
        ],
        out_specs=pl.BlockSpec((1, H * W, Cout), lambda n: (n, 0, 0)),
        compiler_params=pltpu.CompilerParams(
            dimension_semantics=("parallel",), vmem_limit_bytes=_VMEM_LIMIT),
    )(xp, c["w"], c["b"])
    return out.reshape(N, H, W, Cout)


# ---------------------------------------------------------------------------
# 3x3 stride-2 conv via a single bf16 im2col patch build + single-pass matmul
# (dense block-diagonal weights for grouped convs — no group loop, no concat).
# ---------------------------------------------------------------------------
def conv3x3_patch(x, c):
    N, H, W, Cin = x.shape
    s, p = c["stride"], c["pad"]
    Ho = (H + 2 * p - 3) // s + 1
    Wo = (W + 2 * p - 3) // s + 1
    xp = jnp.pad(x, ((0, 0), (p, p), (p, p), (0, 0)))
    cols = [xp[:, kh:kh + s * (Ho - 1) + 1:s, kw:kw + s * (Wo - 1) + 1:s, :]
            for kh in range(3) for kw in range(3)]
    patches = jnp.concatenate(cols, axis=-1).reshape(N * Ho * Wo, 9 * Cin)
    y = matmul_bias_act(patches, c["w"], c["b"], c["act"])
    return y.reshape(N, Ho, Wo, -1)


def apply_conv(x, c):
    kind = c["kind"]
    if kind == "mm":                       # 1x1 (or centre-tap-reduced 3x3)
        N, H, W, Cin = x.shape
        y = matmul_bias_act(x.reshape(N * H * W, Cin), c["w"], c["b"], c["act"])
        return y.reshape(N, H, W, -1)
    if kind == "slab":                     # 3x3 / stride 1 / pad 1
        return conv3x3_s1(x, c)
    return conv3x3_patch(x, c)             # 3x3 / stride 2 / pad 1


# ---------------------------------------------------------------------------
# Kernel 3: 2x2 / stride-2 max pool, one sample per grid step.  The W-pairing
# comes from a free NHWC reshape (W, C) -> (W/2, 2C).
# ---------------------------------------------------------------------------
def _maxpool_kernel(x_ref, o_ref):
    v = x_ref[0]                               # (Ho, 2, Wo, 2C)
    m = jnp.maximum(v[:, 0], v[:, 1])          # (Ho, Wo, 2C)
    C = o_ref.shape[-1]
    o_ref[0] = jnp.maximum(m[..., :C], m[..., C:])


def max_pool_2x2(x):
    N, H, W, C = x.shape
    Ho, Wo = H // 2, W // 2
    xr = x.reshape(N, Ho, 2, Wo, 2 * C)
    return pl.pallas_call(
        _maxpool_kernel,
        out_shape=jax.ShapeDtypeStruct((N, Ho, Wo, C), x.dtype),
        grid=(N,),
        in_specs=[pl.BlockSpec((1, Ho, 2, Wo, 2 * C), lambda n: (n, 0, 0, 0, 0))],
        out_specs=pl.BlockSpec((1, Ho, Wo, C), lambda n: (n, 0, 0, 0)),
        compiler_params=pltpu.CompilerParams(dimension_semantics=("parallel",)),
    )(xr)


# ---------------------------------------------------------------------------
# Kernel 4: fused conv3 (1x1, BN-folded, no act) + SE module + residual add +
# final ReLU, one sample per grid step.  Saves a full HBM round trip of the
# block's largest tensor and one kernel launch per bottleneck.  Elementwise
# excite/residual math stays in bf16; f32 only for the conv3 accumulation,
# squeeze mean, the two tiny FCs and the sigmoid.
# ---------------------------------------------------------------------------
def _conv3_se_res_kernel(y_ref, w3_ref, b3_ref, r_ref,
                         w1_ref, b1_ref, w2_ref, b2_ref, o_ref):
    y = y_ref[0]                                                    # (HW, C2)
    u = jnp.dot(y, w3_ref[...], preferred_element_type=jnp.float32) + b3_ref[...]
    s = jnp.mean(u, axis=0, keepdims=True).astype(jnp.bfloat16)     # (1, C)
    h = jnp.dot(s, w1_ref[...], preferred_element_type=jnp.float32) + b1_ref[...]
    h = jnp.maximum(h, 0.0).astype(jnp.bfloat16)
    z = jnp.dot(h, w2_ref[...], preferred_element_type=jnp.float32) + b2_ref[...]
    g = (1.0 / (1.0 + jnp.exp(-z))).astype(jnp.bfloat16)            # (1, C)
    out = jnp.maximum(u.astype(jnp.bfloat16) * g + r_ref[0], 0.0)
    o_ref[0] = out.astype(o_ref.dtype)


def conv3_se_residual_relu(y2, residual, blk):
    N, H, W, C2 = y2.shape
    C = blk["w3"].shape[1]
    Crp = blk["se_w1"].shape[1]
    HW = H * W
    y2r = y2.reshape(N, HW, C2)
    rr = residual.reshape(N, HW, C)
    out = pl.pallas_call(
        _conv3_se_res_kernel,
        out_shape=jax.ShapeDtypeStruct((N, HW, C), jnp.bfloat16),
        grid=(N,),
        in_specs=[
            pl.BlockSpec((1, HW, C2), lambda n: (n, 0, 0)),
            pl.BlockSpec((C2, C), lambda n: (0, 0)),
            pl.BlockSpec((1, C), lambda n: (0, 0)),
            pl.BlockSpec((1, HW, C), lambda n: (n, 0, 0)),
            pl.BlockSpec((C, Crp), lambda n: (0, 0)),
            pl.BlockSpec((1, Crp), lambda n: (0, 0)),
            pl.BlockSpec((Crp, C), lambda n: (0, 0)),
            pl.BlockSpec((1, C), lambda n: (0, 0)),
        ],
        out_specs=pl.BlockSpec((1, HW, C), lambda n: (n, 0, 0)),
        compiler_params=pltpu.CompilerParams(
            dimension_semantics=("parallel",), vmem_limit_bytes=_VMEM_LIMIT),
    )(y2r, blk["w3"], blk["b3"], rr,
      blk["se_w1"], blk["se_b1"], blk["se_w2"], blk["se_b2"])
    return out.reshape(N, H, W, C)


# ---------------------------------------------------------------------------
# Deterministic parameter construction (synthetic weights, no checkpoint).
# ---------------------------------------------------------------------------
class PRNG:
    def __init__(self, seed):
        self.key = jax.random.PRNGKey(seed)

    def next(self):
        self.key, sub = jax.random.split(self.key)
        return sub


def init_conv(rng, kh, kw, cin_g, cout):
    std = math.sqrt(2.0 / (kh * kw * cin_g))
    return std * jax.random.normal(rng.next(), (kh, kw, cin_g, cout), jnp.float32)


def init_bn(rng, c):
    return dict(
        gamma=1.0 + 0.1 * jax.random.normal(rng.next(), (c,), jnp.float32),
        beta=0.1 * jax.random.normal(rng.next(), (c,), jnp.float32),
        mean=0.1 * jax.random.normal(rng.next(), (c,), jnp.float32),
        var=jnp.abs(1.0 + 0.1 * jax.random.normal(rng.next(), (c,), jnp.float32)),
    )


EXPANSION = 4  # SEBottleneck.expansion


def make_senet_params(rng, layers, groups, reduction, inplanes=128, num_classes=10,
                      downsample_kernel_size=3, downsample_padding=1):
    p = {}
    p["layer0"] = dict(
        conv1=init_conv(rng, 3, 3, 3, 64), bn1=init_bn(rng, 64),
        conv2=init_conv(rng, 3, 3, 64, 64), bn2=init_bn(rng, 64),
        conv3=init_conv(rng, 3, 3, 64, inplanes), bn3=init_bn(rng, inplanes),
    )
    cur = [inplanes]

    def make_layer(planes, blocks, stride, dks, dpad):
        blks = []
        for b in range(blocks):
            s = stride if b == 0 else 1
            w2c, w4c = planes * 2, planes * 4
            blk = dict(
                stride=s,
                conv1=init_conv(rng, 1, 1, cur[0], w2c), bn1=init_bn(rng, w2c),
                conv2=init_conv(rng, 3, 3, w2c // groups, w4c), bn2=init_bn(rng, w4c),
                conv3=init_conv(rng, 1, 1, w4c, w4c), bn3=init_bn(rng, w4c),
            )
            cr = w4c // reduction
            blk["se_w1"] = init_conv(rng, 1, 1, w4c, cr).reshape(w4c, cr)
            blk["se_b1"] = jnp.zeros((cr,), jnp.float32)
            blk["se_w2"] = init_conv(rng, 1, 1, cr, w4c).reshape(cr, w4c)
            blk["se_b2"] = jnp.zeros((w4c,), jnp.float32)
            if b == 0 and (s != 1 or cur[0] != planes * EXPANSION):
                blk["down_conv"] = init_conv(rng, dks, dks, cur[0], planes * EXPANSION)
                blk["down_bn"] = init_bn(rng, planes * EXPANSION)
            blks.append(blk)
            cur[0] = planes * EXPANSION
        return blks

    p["layer1"] = make_layer(64, layers[0], 1, 1, 0)
    p["layer2"] = make_layer(128, layers[1], 2, downsample_kernel_size, downsample_padding)
    p["layer3"] = make_layer(256, layers[2], 2, downsample_kernel_size, downsample_padding)
    p["layer4"] = make_layer(512, layers[3], 2, downsample_kernel_size, downsample_padding)
    p["fc_w"] = 0.02 * jax.random.normal(rng.next(), (512 * EXPANSION, num_classes), jnp.float32)
    p["fc_b"] = jnp.zeros((num_classes,), jnp.float32)
    return p


# ---------------------------------------------------------------------------
# One-time parameter preparation: fold BN, expand grouped convs to dense
# block-diagonal weights, reduce layer4's 3x3 convs (1x1 maps) to their centre
# tap, pre-reshape/cast everything to the kernel layouts, pad the SE squeeze
# dim and the fc output dim to lane multiples.
# ---------------------------------------------------------------------------
def bn_fold(bn, eps=1e-5):
    scale = bn["gamma"] / jnp.sqrt(bn["var"] + eps)
    bias = bn["beta"] - bn["mean"] * scale
    return scale, bias


def block_diag_expand(w_hwio, groups):
    KH, KW, Cg, Cout = w_hwio.shape
    Cout_g = Cout // groups
    wd = jnp.zeros((KH, KW, groups * Cg, Cout), w_hwio.dtype)
    for g in range(groups):
        wd = wd.at[:, :, g * Cg:(g + 1) * Cg,
                   g * Cout_g:(g + 1) * Cout_g].set(
            w_hwio[:, :, :, g * Cout_g:(g + 1) * Cout_g])
    return wd


def _fold(w_hwio, bn, groups):
    scale, bias = bn_fold(bn)
    w = w_hwio * scale                       # per-output-channel BN scale
    if groups > 1:
        w = block_diag_expand(w, groups)     # dense block-diagonal weights
    return w, bias


def _prep_conv1x1(w_hwio, bn, act, groups=1):
    w, bias = _fold(w_hwio, bn, groups)
    Cin, Cout = w.shape[2], w.shape[3]
    return dict(kind="mm", act=act,
                w=w.reshape(Cin, Cout).astype(jnp.bfloat16),
                b=bias.reshape(1, Cout).astype(jnp.float32))


def _prep_conv3x3(w_hwio, bn, act, stride, hw_in, groups=1):
    """3x3 conv, padding=1.  hw_in is the (square) input spatial size."""
    w, bias = _fold(w_hwio, bn, groups)
    Cin, Cout = w.shape[2], w.shape[3]
    b = bias.reshape(1, Cout).astype(jnp.float32)
    if hw_in == 1:
        # 3x3/pad=1 on a 1x1 map: only the centre tap sees data -> plain 1x1.
        return dict(kind="mm", act=act, w=w[1, 1].astype(jnp.bfloat16), b=b)
    if stride == 1:
        return dict(kind="slab", act=act,
                    w=w.reshape(9 * Cin, Cout).astype(jnp.bfloat16), b=b)
    return dict(kind="patch", act=act, stride=stride, pad=1,
                w=w.reshape(9 * Cin, Cout).astype(jnp.bfloat16), b=b)


def prepare_params(params, groups, input_hw=64, num_classes=10):
    prep = {}
    hw = input_hw
    l0 = params["layer0"]
    # x.repeat(1, 3, 1, 1): the 3 conv1 input channels see identical data, so
    # the replication is folded into the weights (sum over the Cin axis).
    w1 = jnp.sum(l0["conv1"], axis=2, keepdims=True)
    c0a = _prep_conv3x3(w1, l0["bn1"], "relu", 2, hw)
    hw = (hw - 1) // 2 + 1
    prep["layer0"] = [
        c0a,
        _prep_conv3x3(l0["conv2"], l0["bn2"], "relu", 1, hw),
        _prep_conv3x3(l0["conv3"], l0["bn3"], "relu", 1, hw),
    ]
    for lname in ("layer1", "layer2", "layer3", "layer4"):
        blocks = []
        for blk in params[lname]:
            s = blk["stride"]
            b = dict(
                conv1=_prep_conv1x1(blk["conv1"], blk["bn1"], "relu"),
                conv2=_prep_conv3x3(blk["conv2"], blk["bn2"], "relu", s, hw,
                                    groups=groups),
            )
            # conv3 (1x1, no act) is fused into the SE/residual kernel.
            c3 = _prep_conv1x1(blk["conv3"], blk["bn3"], "none")
            b["w3"], b["b3"] = c3["w"], c3["b"]
            C = blk["se_w2"].shape[1]
            Cr = blk["se_w1"].shape[1]
            Crp = max(128, _round_up(Cr, 128))
            b["se_w1"] = jnp.pad(blk["se_w1"], ((0, 0), (0, Crp - Cr))).astype(jnp.bfloat16)
            b["se_b1"] = jnp.pad(blk["se_b1"], (0, Crp - Cr)).reshape(1, Crp).astype(jnp.float32)
            b["se_w2"] = jnp.pad(blk["se_w2"], ((0, Crp - Cr), (0, 0))).astype(jnp.bfloat16)
            b["se_b2"] = blk["se_b2"].reshape(1, C).astype(jnp.float32)
            if "down_conv" in blk:
                dks = blk["down_conv"].shape[0]
                if dks == 1:
                    b["down"] = _prep_conv1x1(blk["down_conv"], blk["down_bn"], "none")
                else:
                    b["down"] = _prep_conv3x3(blk["down_conv"], blk["down_bn"],
                                              "none", s, hw)
            blocks.append(b)
            hw = (hw - 1) // s + 1            # conv2 output spatial size
        prep[lname] = blocks
        if lname != "layer4":
            hw = hw // 2                      # 2x2/stride-2 max pool follows
    # fc: pad the output classes to a lane-dense 128; slice logits afterwards.
    ncp = _round_up(num_classes, 128)
    prep["fc_w"] = jnp.pad(params["fc_w"],
                           ((0, 0), (0, ncp - num_classes))).astype(jnp.bfloat16)
    prep["fc_b"] = jnp.pad(params["fc_b"],
                           (0, ncp - num_classes)).reshape(1, ncp).astype(jnp.float32)
    prep["num_classes"] = num_classes
    return prep


# ---------------------------------------------------------------------------
# Forward pass
# ---------------------------------------------------------------------------
def se_bottleneck_forward(x, blk):
    out = apply_conv(x, blk["conv1"])          # 1x1 + ReLU
    out = apply_conv(out, blk["conv2"])        # 3x3 (slab / patch / centre-tap)
    residual = apply_conv(x, blk["down"]) if "down" in blk else x
    return conv3_se_residual_relu(out, residual, blk)


def senet_forward(x_nchw, prep):
    # NCHW -> NHWC; x.repeat(1, 3, 1, 1) is folded into the conv1 weights.
    x = jnp.transpose(x_nchw, (0, 2, 3, 1)).astype(jnp.bfloat16)

    for c in prep["layer0"]:
        x = apply_conv(x, c)
    for blk in prep["layer1"]:
        x = se_bottleneck_forward(x, blk)
    x = max_pool_2x2(x)
    for blk in prep["layer2"]:
        x = se_bottleneck_forward(x, blk)
    x = max_pool_2x2(x)
    for blk in prep["layer3"]:
        x = se_bottleneck_forward(x, blk)
    x = max_pool_2x2(x)
    for blk in prep["layer4"]:
        x = se_bottleneck_forward(x, blk)

    # logits(): AvgPool2d(1) stride 1 is the identity; H = W = 1 here so the
    # NHWC flatten equals PyTorch's NCHW x.view(N, -1).
    # TODO(synk): nn.Dropout is stochastic in train mode; identity at inference.
    N = x.shape[0]
    feat = x.reshape(N, -1)
    logits = matmul_bias_act(feat, prep["fc_w"], prep["fc_b"], act="none",
                             out_dtype=jnp.float32)
    return logits[:, :prep["num_classes"]]


if __name__ == "__main__":
    rng = PRNG(0)
    GROUPS = 2
    REDUCTION = 16
    NUM_CLASSES = 10
    params = make_senet_params(rng, layers=[1, 1, 1, 1], groups=GROUPS,
                               reduction=REDUCTION, inplanes=128,
                               num_classes=NUM_CLASSES,
                               downsample_kernel_size=3, downsample_padding=1)
    prep = prepare_params(params, GROUPS, input_hw=64, num_classes=NUM_CLASSES)

    # Input: NCHW single-channel 64x64 (spatial collapses to 1x1 by layer4).
    x = jax.random.normal(jax.random.PRNGKey(0), (2, 1, 64, 64), jnp.float32)

    logits = senet_forward(x, prep)
    logits = jax.block_until_ready(logits)
    assert logits.shape == (2, NUM_CLASSES), logits.shape
    assert bool(jnp.all(jnp.isfinite(logits)))
    print("KERNEL_OK")
</pallas_src>

<mosaic_0001>
module attributes {stable_mosaic.version = 11 : i64} {
  func.func @_matmul_bias_act_kernel(%arg0: i32, %arg1: i32, %arg2: memref<512x9xbf16, #tpu.memory_space<vmem>>, %arg3: memref<9x64xbf16, #tpu.memory_space<vmem>>, %arg4: memref<1x64xf32, #tpu.memory_space<vmem>>, %arg5: memref<512x64xbf16, #tpu.memory_space<vmem>>) attributes {dimension_semantics = [#tpu.dimension_semantics<parallel>, #tpu.dimension_semantics<parallel>], iteration_bounds = array<i64: 4, 1>, scalar_prefetch = 0 : i64, scratch_operands = 0 : i64, tpu.core_type = #tpu.core_type<tc>, window_params = [{transform_indices = @transform_0, window_bounds = array<i64: 512, 9>}, {transform_indices = @transform_1, window_bounds = array<i64: 9, 64>}, {transform_indices = @transform_2, window_bounds = array<i64: 1, 64>}, {transform_indices = @transform_3, window_bounds = array<i64: 512, 64>}]} {
    %c0 = arith.constant 0 : index
    %c0_0 = arith.constant 0 : index
    %0 = vector.load %arg2[%c0, %c0_0] : memref<512x9xbf16, #tpu.memory_space<vmem>>, vector<512x9xbf16>
    %c0_1 = arith.constant 0 : index
    %c0_2 = arith.constant 0 : index
    %1 = vector.load %arg3[%c0_1, %c0_2] : memref<9x64xbf16, #tpu.memory_space<vmem>>, vector<9x64xbf16>
    %cst = arith.constant dense<0.000000e+00> : vector<512x64xf32>
    %2 = tpu.matmul %0, %1, %cst {dimension_numbers = #tpu.dot_dimension_numbers<[1], [0], [0], [1], [0, 0, 1, 1], [], []>} : vector<512x9xbf16>, vector<9x64xbf16>, vector<512x64xf32> -> vector<512x64xf32>
    %c0_3 = arith.constant 0 : index
    %c0_4 = arith.constant 0 : index
    %3 = vector.load %arg4[%c0_3, %c0_4] : memref<1x64xf32, #tpu.memory_space<vmem>>, vector<1x64xf32>
    %4 = vector.broadcast %3 : vector<1x64xf32> to vector<512x64xf32>
    %5 = arith.addf %2, %4 : vector<512x64xf32>
    %cst_5 = arith.constant 0.000000e+00 : f32
    %6 = vector.broadcast %cst_5 : f32 to vector<512x64xf32>
    %7 = arith.maximumf %5, %6 : vector<512x64xf32>
    %8 = arith.truncf %7 : vector<512x64xf32> to vector<512x64xbf16>
    %c0_6 = arith.constant 0 : index
    %c0_7 = arith.constant 0 : index
    %9 = vector.load %arg5[%c0_6, %c0_7] : memref<512x64xbf16, #tpu.memory_space<vmem>>, vector<512x64xbf16>
    tpu.vector_store %arg5[%c0_6, %c0_7], %8 {strides = array<i32>} : memref<512x64xbf16, #tpu.memory_space<vmem>>, vector<512x64xbf16>,
    return
  }
  func.func @transform_0(%arg0: i32, %arg1: i32) -> (i32, i32) {
    %c0_i32 = arith.constant 0 : i32
    %c0_i32_0 = arith.constant 0 : i32
    return %arg0, %c0_i32 : i32, i32
  }
  func.func @transform_1(%arg0: i32, %arg1: i32) -> (i32, i32) {
    %c0_i32 = arith.constant 0 : i32
    %c0_i32_0 = arith.constant 0 : i32
    return %c0_i32, %arg1 : i32, i32
  }
  func.func @transform_2(%arg0: i32, %arg1: i32) -> (i32, i32) {
    %c0_i32 = arith.constant 0 : i32
    %c0_i32_0 = arith.constant 0 : i32
    return %c0_i32, %arg1 : i32, i32
  }
  func.func @transform_3(%arg0: i32, %arg1: i32) -> (i32, i32) {
    %c0_i32 = arith.constant 0 : i32
    return %arg0, %arg1 : i32, i32
  }
}

</mosaic_0001>

<bundles_post_ra>
// kernel: tpu_custom_call.1
= control target key start
LH: loop header
LB: loop body
LE: loop exit
PB: predicated region body
PF: predicated region fallthrough
CT: control target
= control target key end

     0   :  { %s1313_s12 = smov 0   ;;  %s1315_s13 = smov 0   ;;  %s1624_s0 = inlined_call_operand.vmem [shape: bf16[2048,9], index: 0, kind: input, shape index: {}]   ;;  %s1625_s1 = inlined_call_operand.vmem [shape: bf16[9,64], index: 1, kind: input, shape index: {}]   ;;  %s1626_s2 = inlined_call_operand.vmem [shape: f32[1,64], index: 2, kind: input, shape index: {}]   ;;  %s1627_s3 = inlined_call_operand.vmem [shape: bf16[2048,64], index: 3, kind: output, shape index: {}]  }
   0x1   :  { %s1317_s14 = smov 0  }
   0x2 LB: > { %s25_s15 = sadd.s32 1, %s1286_s13  ;;  %p1035_p0 = scmp.ge.s32.totalorder %s1290_s14, 1  ;;  %s1290_s14 = sphi %s1317_s14, %s13_s14   ;;  %s1286_s13 = sphi %s1315_s13, %s1629_s13   ;;  %s1282_s12 = sphi %s1313_s12, %s1628_s12  }
   0x3   : > { %p27_p1 = scmp.ge.s32.totalorder %s25_s15, 4  ;;  %p169_p2 = scmp.lt.s32.totalorder %s1290_s14, 5 }
   0x5   : > { %s1631_s15 = smov (%p27_p1, %s25_s15), 0  ;;  %p170_p3 = pnand %p1035_p0, %p169_p2 }
   0x6   : > { %s1036_s20 = sshll.u32 (!%p170_p3), %s1282_s12, 6 }
   0x7   : > { %173 = sbr.rel (%p170_p3) target bundleno = 282 (0x11a), region = 32  ;;  %p204_p4 = scmp.lt.s32.totalorder (!%p170_p3), %s1036_s20, 255 }
   0xc   : > { %v1170_v0 = vld [vmem:[%s1625_s1] sm:$0xf]  ;;  %v1238_v1 = vld [vmem:[%s1625_s1] sm:$0x10]  ;;  %vm558_vm0 = vcmask 1043456   ;;  %vm559_vm1 = vcmask 1044480  }
   0xd   : > { %v1171_v2 = vor.u32 %v1238_v1, %v1170_v0  ;;  %v1292_v3 = vmov 65535   ;;  %s1633_s20 = smov (!%p204_p4, %s1036_s20), 255  ;;  %vm461_vm2 = vcmask 72704   ;;  %v1414_v39 = vld [vmem:[%s1626_s2] ss:$0 sm:$0xff]  ;;  %vm862_vm3 = vcmask 519168  }
   0xe   : > { %v560_v4 = vsel %vm558_vm0, 4294967295, %v1292_v3  ;;  %s1037_s21 = sshll.u32 %s1633_s20, 2 }
   0xf   : > { %v561_v5 = vsel %vm559_vm1, %v560_v4, 0  ;;  %s1345_s24 = scalar_lea.vmem %s1624_s0, %s1037_s21  ;;  %s1423_s29 = scalar_lea.vmem %s1627_s3, %s1037_s21 }
  0x10   : > { %v563_v6 = vand.u32 %v1171_v2, %v561_v5  ;;  %v1206_v7 = vld [vmem:[%s1345_s24] sm:$0xff]  ;;  %v1207_v11 = vld [vmem:[%s1345_s24 + $0x8] sm:$0xff]  ;;  %v1208_v15 = vld [vmem:[%s1345_s24 + $0x10] sm:$0xff] }
  0x11   : > { %v1214_v8 = vld [vmem:[%s1345_s24 + $0x40] sm:$0xff]  ;;  %v1215_v12 = vld [vmem:[%s1345_s24 + $0x48] sm:$0xff]  ;;  %v1216_v16 = vld [vmem:[%s1345_s24 + $0x50] sm:$0xff] }
  0x12   : > { %572 = vmatpush.bf16.msra.mxu0 %v563_v6  ;;  %1239 = vmatpush.bf16.msra.mxu1 %v563_v6  ;;  %v1222_v9 = vld [vmem:[%s1345_s24 + $0x80] sm:$0xff]  ;;  %v1223_v13 = vld [vmem:[%s1345_s24 + $0x88] sm:$0xff]  ;;  %v1224_v17 = vld [vmem:[%s1345_s24 + $0x90] sm:$0xff] }
  0x13   : > { %1240 = vmatpush.bf16.msra.mxu2 %v563_v6  ;;  %1241 = vmatpush.bf16.msra.mxu3 %v563_v6  ;;  %v1230_v10 = vld [vmem:[%s1345_s24 + $0xc0] sm:$0xff]  ;;  %v1231_v14 = vld [vmem:[%s1345_s24 + $0xc8] sm:$0xff]  ;;  %v1232_v18 = vld [vmem:[%s1345_s24 + $0xd0] sm:$0xff] }
  0x14   : > { %v1209_v19 = vld [vmem:[%s1345_s24 + $0x18] sm:$0xff]  ;;  %v1210_v23 = vld [vmem:[%s1345_s24 + $0x20] sm:$0xff]  ;;  %v1211_v27 = vld [vmem:[%s1345_s24 + $0x28] sm:$0xff] }
  0x15   : > { %1172 = vmatmul.msk.bf16.vlgmr.msra.gmra.mxu0 %vm461_vm2, %v1206_v7  ;;  %1180 = vmatmul.msk.bf16.vlgmr.msra.gmra.mxu1 %vm461_vm2, %v1214_v8  ;;  %v1217_v20 = vld [vmem:[%s1345_s24 + $0x58] sm:$0xff]  ;;  %v1218_v24 = vld [vmem:[%s1345_s24 + $0x60] sm:$0xff]  ;;  %v1219_v28 = vld [vmem:[%s1345_s24 + $0x68] sm:$0xff] }
  0x16   : > { %1188 = vmatmul.msk.bf16.vlgmr.msra.gmra.mxu2 %vm461_vm2, %v1222_v9  ;;  %1196 = vmatmul.msk.bf16.vlgmr.msra.gmra.mxu3 %vm461_vm2, %v1230_v10  ;;  %v1225_v21 = vld [vmem:[%s1345_s24 + $0x98] sm:$0xff]  ;;  %v1226_v25 = vld [vmem:[%s1345_s24 + $0xa0] sm:$0xff]  ;;  %v1227_v29 = vld [vmem:[%s1345_s24 + $0xa8] sm:$0xff] }
  0x17   : > { %v1233_v22 = vld [vmem:[%s1345_s24 + $0xd8] sm:$0xff]  ;;  %v1234_v26 = vld [vmem:[%s1345_s24 + $0xe0] sm:$0xff]  ;;  %v1235_v30 = vld [vmem:[%s1345_s24 + $0xe8] sm:$0xff] }
  0x18   : > { %v1212_v31 = vld [vmem:[%s1345_s24 + $0x30] sm:$0xff]  ;;  %v1213_v35 = vld [vmem:[%s1345_s24 + $0x38] sm:$0xff] }
  0x19   : > { %v1220_v32 = vld [vmem:[%s1345_s24 + $0x70] sm:$0xff]  ;;  %v1221_v36 = vld [vmem:[%s1345_s24 + $0x78] sm:$0xff] }
  0x1a   : > { %v1228_v33 = vld [vmem:[%s1345_s24 + $0xb0] sm:$0xff]  ;;  %v1229_v37 = vld [vmem:[%s1345_s24 + $0xb8] sm:$0xff] }
  0x1b   : > { %v1236_v34 = vld [vmem:[%s1345_s24 + $0xf0] sm:$0xff]  ;;  %v1237_v38 = vld [vmem:[%s1345_s24 + $0xf8] sm:$0xff] }
  0x25   : > { %1173 = vmatmul.msk.bf16.gmra.mxu0 %vm461_vm2, %v1207_v11  ;;  %1181 = vmatmul.msk.bf16.gmra.mxu1 %vm461_vm2, %v1215_v12 }
  0x26   : > { %1189 = vmatmul.msk.bf16.gmra.mxu2 %vm461_vm2, %v1223_v13  ;;  %1197 = vmatmul.msk.bf16.gmra.mxu3 %vm461_vm2, %v1231_v14 }
  0x35   : > { %1174 = vmatmul.msk.bf16.gmra.mxu0 %vm461_vm2, %v1208_v15  ;;  %1182 = vmatmul.msk.bf16.gmra.mxu1 %vm461_vm2, %v1216_v16 }
  0x36   : > { %1190 = vmatmul.msk.bf16.gmra.mxu2 %vm461_vm2, %v1224_v17  ;;  %1198 = vmatmul.msk.bf16.gmra.mxu3 %vm461_vm2, %v1232_v18 }
  0x45   : > { %1175 = vmatmul.msk.bf16.gmra.mxu0 %vm461_vm2, %v1209_v19  ;;  %1183 = vmatmul.msk.bf16.gmra.mxu1 %vm461_vm2, %v1217_v20 }
  0x46   : > { %1191 = vmatmul.msk.bf16.gmra.mxu2 %vm461_vm2, %v1225_v21  ;;  %1199 = vmatmul.msk.bf16.gmra.mxu3 %vm461_vm2, %v1233_v22 }
  0x55   : > { %1176 = vmatmul.msk.bf16.gmra.mxu0 %vm461_vm2, %v1210_v23  ;;  %1184 = vmatmul.msk.bf16.gmra.mxu1 %vm461_vm2, %v1218_v24 }
  0x56   : > { %1192 = vmatmul.msk.bf16.gmra.mxu2 %vm461_vm2, %v1226_v25  ;;  %1200 = vmatmul.msk.bf16.gmra.mxu3 %vm461_vm2, %v1234_v26 }
  0x65   : > { %1177 = vmatmul.msk.bf16.gmra.mxu0 %vm461_vm2, %v1211_v27  ;;  %1185 = vmatmul.msk.bf16.gmra.mxu1 %vm461_vm2, %v1219_v28 }
  0x66   : > { %1193 = vmatmul.msk.bf16.gmra.mxu2 %vm461_vm2, %v1227_v29  ;;  %1201 = vmatmul.msk.bf16.gmra.mxu3 %vm461_vm2, %v1235_v30 }
  0x75   : > { %1178 = vmatmul.msk.bf16.gmra.mxu0 %vm461_vm2, %v1212_v31  ;;  %1186 = vmatmul.msk.bf16.gmra.mxu1 %vm461_vm2, %v1220_v32 }
  0x76   : > { %1194 = vmatmul.msk.bf16.gmra.mxu2 %vm461_vm2, %v1228_v33  ;;  %1202 = vmatmul.msk.bf16.gmra.mxu3 %vm461_vm2, %v1236_v34 }
  0x85   : > { %1179 = vmatmul.msk.bf16.gmra.mxu0 %vm461_vm2, %v1213_v35  ;;  %1187 = vmatmul.msk.bf16.gmra.mxu1 %vm461_vm2, %v1221_v36 }
  0x86   : > { %1195 = vmatmul.msk.bf16.gmra.mxu2 %vm461_vm2, %v1229_v37  ;;  %1203 = vmatmul.msk.bf16.gmra.mxu3 %vm461_vm2, %v1237_v38 }
  0x92   : > { %v574_v40 = vpop.f32.mrf.mxu0  ;;  %v614_v41 = vpop.f32.mrf.mxu1 }
  0x93   : > { %v575_v42 = vadd.f32 %v1414_v39, %v574_v40  ;;  %v615_v43 = vadd.f32 %v1414_v39, %v614_v41 }
  0x95   : > { %v734_v44 = vmax.f32 %v575_v42, 0.0  ;;  %v750_v45 = vmax.f32 %v615_v43, 0.0 }
  0x97   : > { %v798_v46 = vpack.c.bf16 %v734_v44, %v734_v44  ;;  %v814_v47 = vpack.c.bf16 %v750_v45, %v750_v45 }
  0x99   : > { %863 = vst.msk [vmem:[%s1423_s29] sm:$0xf] %vm862_vm3, %v798_v46  ;;  %v654_v48 = vpop.f32.mrf.mxu2  ;;  %v694_v49 = vpop.f32.mrf.mxu3 }
  0x9a   : > { %879 = vst.msk [vmem:[%s1423_s29 + $0x40] sm:$0xf] %vm862_vm3, %v814_v47  ;;  %v655_v50 = vadd.f32 %v1414_v39, %v654_v48  ;;  %v695_v51 = vadd.f32 %v1414_v39, %v694_v49  ;;  %v576_v52 = vpop.f32.mrf.mxu0  ;;  %v616_v53 = vpop.f32.mrf.mxu1 }
  0x9b   : > { %v577_v54 = vadd.f32 %v1414_v39, %v576_v52  ;;  %v617_v55 = vadd.f32 %v1414_v39, %v616_v53 }
  0x9c   : > { %v766_v56 = vmax.f32 %v655_v50, 0.0  ;;  %v782_v57 = vmax.f32 %v695_v51, 0.0 }
  0x9d   : > { %v735_v58 = vmax.f32 %v577_v54, 0.0  ;;  %v751_v59 = vmax.f32 %v617_v55, 0.0 }
  0x9e   : > { %v830_v60 = vpack.c.bf16 %v766_v56, %v766_v56  ;;  %v846_v61 = vpack.c.bf16 %v782_v57, %v782_v57 }
  0x9f   : > { %v799_v62 = vpack.c.bf16 %v735_v58, %v735_v58  ;;  %v815_v63 = vpack.c.bf16 %v751_v59, %v751_v59 }
  0xa0   : > { %895 = vst.msk [vmem:[%s1423_s29 + $0x80] sm:$0xf] %vm862_vm3, %v830_v60 }
  0xa1   : > { %911 = vst.msk [vmem:[%s1423_s29 + $0xc0] sm:$0xf] %vm862_vm3, %v846_v61  ;;  %v656_v0 = vpop.f32.mrf.mxu2  ;;  %v696_v1 = vpop.f32.mrf.mxu3 }
  0xa2   : > { %864 = vst.msk [vmem:[%s1423_s29 + $0x4] sm:$0xf] %vm862_vm3, %v799_v62  ;;  %v657_v2 = vadd.f32 %v1414_v39, %v656_v0  ;;  %v697_v3 = vadd.f32 %v1414_v39, %v696_v1  ;;  %v579_v4 = vpop.f32.mrf.mxu0  ;;  %v619_v5 = vpop.f32.mrf.mxu1 }
  0xa3   : > { %880 = vst.msk [vmem:[%s1423_s29 + $0x44] sm:$0xf] %vm862_vm3, %v815_v63  ;;  %v580_v6 = vadd.f32 %v1414_v39, %v579_v4  ;;  %v620_v7 = vadd.f32 %v1414_v39, %v619_v5 }
  0xa4   : > { %v767_v8 = vmax.f32 %v657_v2, 0.0  ;;  %v783_v9 = vmax.f32 %v697_v3, 0.0 }
  0xa5   : > { %v736_v10 = vmax.f32 %v580_v6, 0.0  ;;  %v752_v11 = vmax.f32 %v620_v7, 0.0 }
  0xa6   : > { %v831_v12 = vpack.c.bf16 %v767_v8, %v767_v8  ;;  %v847_v13 = vpack.c.bf16 %v783_v9, %v783_v9 }
  0xa7   : > { %v800_v14 = vpack.c.bf16 %v736_v10, %v736_v10  ;;  %v816_v15 = vpack.c.bf16 %v752_v11, %v752_v11 }
  0xa8   : > { %896 = vst.msk [vmem:[%s1423_s29 + $0x84] sm:$0xf] %vm862_vm3, %v831_v12 }
  0xa9   : > { %912 = vst.msk [vmem:[%s1423_s29 + $0xc4] sm:$0xf] %vm862_vm3, %v847_v13  ;;  %v659_v16 = vpop.f32.mrf.mxu2  ;;  %v699_v17 = vpop.f32.mrf.mxu3 }
  0xaa   : > { %865 = vst.msk [vmem:[%s1423_s29 + $0x8] sm:$0xf] %vm862_vm3, %v800_v14  ;;  %v660_v18 = vadd.f32 %v1414_v39, %v659_v16  ;;  %v700_v19 = vadd.f32 %v1414_v39, %v699_v17  ;;  %v581_v20 = vpop.f32.mrf.mxu0  ;;  %v621_v21 = vpop.f32.mrf.mxu1 }
  0xab   : > { %881 = vst.msk [vmem:[%s1423_s29 + $0x48] sm:$0xf] %vm862_vm3, %v816_v15  ;;  %v582_v22 = vadd.f32 %v1414_v39, %v581_v20  ;;  %v622_v23 = vadd.f32 %v1414_v39, %v621_v21 }
  0xac   : > { %v768_v24 = vmax.f32 %v660_v18, 0.0  ;;  %v784_v25 = vmax.f32 %v700_v19, 0.0 }
  0xad   : > { %v737_v26 = vmax.f32 %v582_v22, 0.0  ;;  %v753_v27 = vmax.f32 %v622_v23, 0.0 }
  0xae   : > { %v832_v28 = vpack.c.bf16 %v768_v24, %v768_v24  ;;  %v848_v29 = vpack.c.bf16 %v784_v25, %v784_v25 }
  0xaf   : > { %v801_v30 = vpack.c.bf16 %v737_v26, %v737_v26  ;;  %v817_v31 = vpack.c.bf16 %v753_v27, %v753_v27 }
  0xb0   : > { %897 = vst.msk [vmem:[%s1423_s29 + $0x88] sm:$0xf] %vm862_vm3, %v832_v28 }
  0xb1   : > { %913 = vst.msk [vmem:[%s1423_s29 + $0xc8] sm:$0xf] %vm862_vm3, %v848_v29  ;;  %v661_v32 = vpop.f32.mrf.mxu2  ;;  %v701_v33 = vpop.f32.mrf.mxu3 }
  0xb2   : > { %866 = vst.msk [vmem:[%s1423_s29 + $0xc] sm:$0xf] %vm862_vm3, %v801_v30  ;;  %v662_v34 = vadd.f32 %v1414_v39, %v661_v32  ;;  %v702_v35 = vadd.f32 %v1414_v39, %v701_v33  ;;  %v584_v36 = vpop.f32.mrf.mxu0  ;;  %v624_v37 = vpop.f32.mrf.mxu1 }
  0xb3   : > { %882 = vst.msk [vmem:[%s1423_s29 + $0x4c] sm:$0xf] %vm862_vm3, %v817_v31  ;;  %v585_v38 = vadd.f32 %v1414_v39, %v584_v36  ;;  %v625_v40 = vadd.f32 %v1414_v39, %v624_v37 }
  0xb4   : > { %v769_v41 = vmax.f32 %v662_v34, 0.0  ;;  %v785_v42 = vmax.f32 %v702_v35, 0.0 }
  0xb5   : > { %v738_v43 = vmax.f32 %v585_v38, 0.0  ;;  %v754_v44 = vmax.f32 %v625_v40, 0.0 }
  0xb6   : > { %v833_v45 = vpack.c.bf16 %v769_v41, %v769_v41  ;;  %v849_v46 = vpack.c.bf16 %v785_v42, %v785_v42 }
  0xb7   : > { %v802_v47 = vpack.c.bf16 %v738_v43, %v738_v43  ;;  %v818_v48 = vpack.c.bf16 %v754_v44, %v754_v44 }
  0xb8   : > { %898 = vst.msk [vmem:[%s1423_s29 + $0x8c] sm:$0xf] %vm862_vm3, %v833_v45 }
  0xb9   : > { %914 = vst.msk [vmem:[%s1423_s29 + $0xcc] sm:$0xf] %vm862_vm3, %v849_v46  ;;  %v664_v49 = vpop.f32.mrf.mxu2  ;;  %v704_v50 = vpop.f32.mrf.mxu3 }
  0xba   : > { %867 = vst.msk [vmem:[%s1423_s29 + $0x10] sm:$0xf] %vm862_vm3, %v802_v47  ;;  %v665_v51 = vadd.f32 %v1414_v39, %v664_v49  ;;  %v705_v52 = vadd.f32 %v1414_v39, %v704_v50  ;;  %v586_v53 = vpop.f32.mrf.mxu0  ;;  %v626_v54 = vpop.f32.mrf.mxu1 }
  0xbb   : > { %883 = vst.msk [vmem:[%s1423_s29 + $0x50] sm:$0xf] %vm862_vm3, %v818_v48  ;;  %v587_v55 = vadd.f32 %v1414_v39, %v586_v53  ;;  %v627_v56 = vadd.f32 %v1414_v39, %v626_v54 }
  0xbc   : > { %v770_v57 = vmax.f32 %v665_v51, 0.0  ;;  %v786_v58 = vmax.f32 %v705_v52, 0.0 }
  0xbd   : > { %v739_v59 = vmax.f32 %v587_v55, 0.0  ;;  %v755_v60 = vmax.f32 %v627_v56, 0.0 }
  0xbe   : > { %v834_v61 = vpack.c.bf16 %v770_v57, %v770_v57  ;;  %v850_v62 = vpack.c.bf16 %v786_v58, %v786_v58 }
  0xbf   : > { %v803_v63 = vpack.c.bf16 %v739_v59, %v739_v59  ;;  %v819_v0 = vpack.c.bf16 %v755_v60, %v755_v60 }
  0xc0   : > { %899 = vst.msk [vmem:[%s1423_s29 + $0x90] sm:$0xf] %vm862_vm3, %v834_v61 }
  0xc1   : > { %915 = vst.msk [vmem:[%s1423_s29 + $0xd0] sm:$0xf] %vm862_vm3, %v850_v62  ;;  %v666_v1 = vpop.f32.mrf.mxu2  ;;  %v706_v2 = vpop.f32.mrf.mxu3 }
  0xc2   : > { %868 = vst.msk [vmem:[%s1423_s29 + $0x14] sm:$0xf] %vm862_vm3, %v803_v63  ;;  %v667_v3 = vadd.f32 %v1414_v39, %v666_v1  ;;  %v707_v4 = vadd.f32 %v1414_v39, %v706_v2  ;;  %v589_v5 = vpop.f32.mrf.mxu0  ;;  %v629_v6 = vpop.f32.mrf.mxu1 }
  0xc3   : > { %884 = vst.msk [vmem:[%s1423_s29 + $0x54] sm:$0xf] %vm862_vm3, %v819_v0  ;;  %v590_v7 = vadd.f32 %v1414_v39, %v589_v5  ;;  %v630_v8 = vadd.f32 %v1414_v39, %v629_v6 }
  0xc4   : > { %v771_v9 = vmax.f32 %v667_v3, 0.0  ;;  %v787_v10 = vmax.f32 %v707_v4, 0.0 }
  0xc5   : > { %v740_v11 = vmax.f32 %v590_v7, 0.0  ;;  %v756_v12 = vmax.f32 %v630_v8, 0.0 }
  0xc6   : > { %v835_v13 = vpack.c.bf16 %v771_v9, %v771_v9  ;;  %v851_v14 = vpack.c.bf16 %v787_v10, %v787_v10 }
  0xc7   : > { %v804_v15 = vpack.c.bf16 %v740_v11, %v740_v11  ;;  %v820_v16 = vpack.c.bf16 %v756_v12, %v756_v12 }
  0xc8   : > { %900 = vst.msk [vmem:[%s1423_s29 + $0x94] sm:$0xf] %vm862_vm3, %v835_v13 }
  0xc9   : > { %916 = vst.msk [vmem:[%s1423_s29 + $0xd4] sm:$0xf] %vm862_vm3, %v851_v14  ;;  %v669_v17 = vpop.f32.mrf.mxu2  ;;  %v709_v18 = vpop.f32.mrf.mxu3 }
  0xca   : > { %869 = vst.msk [vmem:[%s1423_s29 + $0x18] sm:$0xf] %vm862_vm3, %v804_v15  ;;  %v670_v19 = vadd.f32 %v1414_v39, %v669_v17  ;;  %v710_v20 = vadd.f32 %v1414_v39, %v709_v18  ;;  %v591_v21 = vpop.f32.mrf.mxu0  ;;  %v631_v22 = vpop.f32.mrf.mxu1 }
  0xcb   : > { %885 = vst.msk [vmem:[%s1423_s29 + $0x58] sm:$0xf] %vm862_vm3, %v820_v16  ;;  %v592_v23 = vadd.f32 %v1414_v39, %v591_v21  ;;  %v632_v24 = vadd.f32 %v1414_v39, %v631_v22 }
  0xcc   : > { %v772_v25 = vmax.f32 %v670_v19, 0.0  ;;  %v788_v26 = vmax.f32 %v710_v20, 0.0 }
  0xcd   : > { %v741_v27 = vmax.f32 %v592_v23, 0.0  ;;  %v757_v28 = vmax.f32 %v632_v24, 0.0 }
  0xce   : > { %v836_v29 = vpack.c.bf16 %v772_v25, %v772_v25  ;;  %v852_v30 = vpack.c.bf16 %v788_v26, %v788_v26 }
  0xcf   : > { %v805_v31 = vpack.c.bf16 %v741_v27, %v741_v27  ;;  %v821_v32 = vpack.c.bf16 %v757_v28, %v757_v28 }
  0xd0   : > { %901 = vst.msk [vmem:[%s1423_s29 + $0x98] sm:$0xf] %vm862_vm3, %v836_v29 }
  0xd1   : > { %917 = vst.msk [vmem:[%s1423_s29 + $0xd8] sm:$0xf] %vm862_vm3, %v852_v30  ;;  %v671_v33 = vpop.f32.mrf.mxu2  ;;  %v711_v34 = vpop.f32.mrf.mxu3 }
  0xd2   : > { %870 = vst.msk [vmem:[%s1423_s29 + $0x1c] sm:$0xf] %vm862_vm3, %v805_v31  ;;  %v672_v35 = vadd.f32 %v1414_v39, %v671_v33  ;;  %v712_v36 = vadd.f32 %v1414_v39, %v711_v34  ;;  %v594_v37 = vpop.f32.mrf.mxu0  ;;  %v634_v38 = vpop.f32.mrf.mxu1 }
  0xd3   : > { %886 = vst.msk [vmem:[%s1423_s29 + $0x5c] sm:$0xf] %vm862_vm3, %v821_v32  ;;  %v595_v40 = vadd.f32 %v1414_v39, %v594_v37  ;;  %v635_v41 = vadd.f32 %v1414_v39, %v634_v38 }
  0xd4   : > { %v773_v42 = vmax.f32 %v672_v35, 0.0  ;;  %v789_v43 = vmax.f32 %v712_v36, 0.0 }
  0xd5   : > { %v742_v44 = vmax.f32 %v595_v40, 0.0  ;;  %v758_v45 = vmax.f32 %v635_v41, 0.0 }
  0xd6   : > { %v837_v46 = vpack.c.bf16 %v773_v42, %v773_v42  ;;  %v853_v47 = vpack.c.bf16 %v789_v43, %v789_v43 }
  0xd7   : > { %v806_v48 = vpack.c.bf16 %v742_v44, %v742_v44  ;;  %v822_v49 = vpack.c.bf16 %v758_v45, %v758_v45 }
  0xd8   : > { %902 = vst.msk [vmem:[%s1423_s29 + $0x9c] sm:$0xf] %vm862_vm3, %v837_v46 }
  0xd9   : > { %918 = vst.msk [vmem:[%s1423_s29 + $0xdc] sm:$0xf] %vm862_vm3, %v853_v47  ;;  %v674_v50 = vpop.f32.mrf.mxu2  ;;  %v714_v51 = vpop.f32.mrf.mxu3 }
  0xda   : > { %871 = vst.msk [vmem:[%s1423_s29 + $0x20] sm:$0xf] %vm862_vm3, %v806_v48  ;;  %v675_v52 = vadd.f32 %v1414_v39, %v674_v50  ;;  %v715_v53 = vadd.f32 %v1414_v39, %v714_v51  ;;  %v596_v54 = vpop.f32.mrf.mxu0  ;;  %v636_v55 = vpop.f32.mrf.mxu1 }
  0xdb   : > { %887 = vst.msk [vmem:[%s1423_s29 + $0x60] sm:$0xf] %vm862_vm3, %v822_v49  ;;  %v597_v56 = vadd.f32 %v1414_v39, %v596_v54  ;;  %v637_v57 = vadd.f32 %v1414_v39, %v636_v55 }
  0xdc   : > { %v774_v58 = vmax.f32 %v675_v52, 0.0  ;;  %v790_v59 = vmax.f32 %v715_v53, 0.0 }
  0xdd   : > { %v743_v60 = vmax.f32 %v597_v56, 0.0  ;;  %v759_v61 = vmax.f32 %v637_v57, 0.0 }
  0xde   : > { %v838_v62 = vpack.c.bf16 %v774_v58, %v774_v58  ;;  %v854_v63 = vpack.c.bf16 %v790_v59, %v790_v59 }
  0xdf   : > { %v807_v0 = vpack.c.bf16 %v743_v60, %v743_v60  ;;  %v823_v1 = vpack.c.bf16 %v759_v61, %v759_v61 }
  0xe0   : > { %903 = vst.msk [vmem:[%s1423_s29 + $0xa0] sm:$0xf] %vm862_vm3, %v838_v62 }
  0xe1   : > { %919 = vst.msk [vmem:[%s1423_s29 + $0xe0] sm:$0xf] %vm862_vm3, %v854_v63  ;;  %v676_v2 = vpop.f32.mrf.mxu2  ;;  %v716_v3 = vpop.f32.mrf.mxu3 }
  0xe2   : > { %872 = vst.msk [vmem:[%s1423_s29 + $0x24] sm:$0xf] %vm862_vm3, %v807_v0  ;;  %v677_v4 = vadd.f32 %v1414_v39, %v676_v2  ;;  %v717_v5 = vadd.f32 %v1414_v39, %v716_v3  ;;  %v599_v6 = vpop.f32.mrf.mxu0  ;;  %v639_v7 = vpop.f32.mrf.mxu1 }
  0xe3   : > { %888 = vst.msk [vmem:[%s1423_s29 + $0x64] sm:$0xf] %vm862_vm3, %v823_v1  ;;  %v600_v8 = vadd.f32 %v1414_v39, %v599_v6  ;;  %v640_v9 = vadd.f32 %v1414_v39, %v639_v7 }
  0xe4   : > { %v775_v10 = vmax.f32 %v677_v4, 0.0  ;;  %v791_v11 = vmax.f32 %v717_v5, 0.0 }
  0xe5   : > { %v744_v12 = vmax.f32 %v600_v8, 0.0  ;;  %v760_v13 = vmax.f32 %v640_v9, 0.0 }
  0xe6   : > { %v839_v14 = vpack.c.bf16 %v775_v10, %v775_v10  ;;  %v855_v15 = vpack.c.bf16 %v791_v11, %v791_v11 }
  0xe7   : > { %v808_v16 = vpack.c.bf16 %v744_v12, %v744_v12  ;;  %v824_v17 = vpack.c.bf16 %v760_v13, %v760_v13 }
  0xe8   : > { %904 = vst.msk [vmem:[%s1423_s29 + $0xa4] sm:$0xf] %vm862_vm3, %v839_v14 }
  0xe9   : > { %920 = vst.msk [vmem:[%s1423_s29 + $0xe4] sm:$0xf] %vm862_vm3, %v855_v15  ;;  %v679_v18 = vpop.f32.mrf.mxu2  ;;  %v719_v19 = vpop.f32.mrf.mxu3 }
  0xea   : > { %873 = vst.msk [vmem:[%s1423_s29 + $0x28] sm:$0xf] %vm862_vm3, %v808_v16  ;;  %v680_v20 = vadd.f32 %v1414_v39, %v679_v18  ;;  %v720_v21 = vadd.f32 %v1414_v39, %v719_v19  ;;  %v601_v22 = vpop.f32.mrf.mxu0  ;;  %v641_v23 = vpop.f32.mrf.mxu1 }
  0xeb   : > { %889 = vst.msk [vmem:[%s1423_s29 + $0x68] sm:$0xf] %vm862_vm3, %v824_v17  ;;  %v602_v24 = vadd.f32 %v1414_v39, %v601_v22  ;;  %v642_v25 = vadd.f32 %v1414_v39, %v641_v23 }
  0xec   : > { %v776_v26 = vmax.f32 %v680_v20, 0.0  ;;  %v792_v27 = vmax.f32 %v720_v21, 0.0 }
  0xed   : > { %v745_v28 = vmax.f32 %v602_v24, 0.0  ;;  %v761_v29 = vmax.f32 %v642_v25, 0.0 }
  0xee   : > { %v840_v30 = vpack.c.bf16 %v776_v26, %v776_v26  ;;  %v856_v31 = vpack.c.bf16 %v792_v27, %v792_v27 }
  0xef   : > { %v809_v32 = vpack.c.bf16 %v745_v28, %v745_v28  ;;  %v825_v33 = vpack.c.bf16 %v761_v29, %v761_v29 }
  0xf0   : > { %905 = vst.msk [vmem:[%s1423_s29 + $0xa8] sm:$0xf] %vm862_vm3, %v840_v30 }
  0xf1   : > { %921 = vst.msk [vmem:[%s1423_s29 + $0xe8] sm:$0xf] %vm862_vm3, %v856_v31  ;;  %v681_v34 = vpop.f32.mrf.mxu2  ;;  %v721_v35 = vpop.f32.mrf.mxu3 }
  0xf2   : > { %874 = vst.msk [vmem:[%s1423_s29 + $0x2c] sm:$0xf] %vm862_vm3, %v809_v32  ;;  %v682_v36 = vadd.f32 %v1414_v39, %v681_v34  ;;  %v722_v37 = vadd.f32 %v1414_v39, %v721_v35  ;;  %v604_v38 = vpop.f32.mrf.mxu0  ;;  %v644_v40 = vpop.f32.mrf.mxu1 }
  0xf3   : > { %890 = vst.msk [vmem:[%s1423_s29 + $0x6c] sm:$0xf] %vm862_vm3, %v825_v33  ;;  %v605_v41 = vadd.f32 %v1414_v39, %v604_v38  ;;  %v645_v42 = vadd.f32 %v1414_v39, %v644_v40 }
  0xf4   : > { %v777_v43 = vmax.f32 %v682_v36, 0.0  ;;  %v793_v44 = vmax.f32 %v722_v37, 0.0 }
  0xf5   : > { %v746_v45 = vmax.f32 %v605_v41, 0.0  ;;  %v762_v46 = vmax.f32 %v645_v42, 0.0 }
  0xf6   : > { %v841_v47 = vpack.c.bf16 %v777_v43, %v777_v43  ;;  %v857_v48 = vpack.c.bf16 %v793_v44, %v793_v44 }
  0xf7   : > { %v810_v49 = vpack.c.bf16 %v746_v45, %v746_v45  ;;  %v826_v50 = vpack.c.bf16 %v762_v46, %v762_v46 }
  0xf8   : > { %906 = vst.msk [vmem:[%s1423_s29 + $0xac] sm:$0xf] %vm862_vm3, %v841_v47 }
  0xf9   : > { %922 = vst.msk [vmem:[%s1423_s29 + $0xec] sm:$0xf] %vm862_vm3, %v857_v48  ;;  %v684_v51 = vpop.f32.mrf.mxu2  ;;  %v724_v52 = vpop.f32.mrf.mxu3 }
  0xfa   : > { %875 = vst.msk [vmem:[%s1423_s29 + $0x30] sm:$0xf] %vm862_vm3, %v810_v49  ;;  %v685_v53 = vadd.f32 %v1414_v39, %v684_v51  ;;  %v725_v54 = vadd.f32 %v1414_v39, %v724_v52  ;;  %v606_v55 = vpop.f32.mrf.mxu0  ;;  %v646_v56 = vpop.f32.mrf.mxu1 }
  0xfb   : > { %891 = vst.msk [vmem:[%s1423_s29 + $0x70] sm:$0xf] %vm862_vm3, %v826_v50  ;;  %v607_v57 = vadd.f32 %v1414_v39, %v606_v55  ;;  %v647_v58 = vadd.f32 %v1414_v39, %v646_v56 }
  0xfc   : > { %v778_v59 = vmax.f32 %v685_v53, 0.0  ;;  %v794_v60 = vmax.f32 %v725_v54, 0.0 }
  0xfd   : > { %v747_v61 = vmax.f32 %v607_v57, 0.0  ;;  %v763_v62 = vmax.f32 %v647_v58, 0.0 }
  0xfe   : > { %v842_v63 = vpack.c.bf16 %v778_v59, %v778_v59  ;;  %v858_v0 = vpack.c.bf16 %v794_v60, %v794_v60 }
  0xff   : > { %v811_v1 = vpack.c.bf16 %v747_v61, %v747_v61  ;;  %v827_v2 = vpack.c.bf16 %v763_v62, %v763_v62 }
 0x100   : > { %907 = vst.msk [vmem:[%s1423_s29 + $0xb0] sm:$0xf] %vm862_vm3, %v842_v63 }
 0x101   : > { %923 = vst.msk [vmem:[%s1423_s29 + $0xf0] sm:$0xf] %vm862_vm3, %v858_v0  ;;  %v686_v3 = vpop.f32.mrf.mxu2  ;;  %v726_v4 = vpop.f32.mrf.mxu3 }
 0x102   : > { %876 = vst.msk [vmem:[%s1423_s29 + $0x34] sm:$0xf] %vm862_vm3, %v811_v1  ;;  %v687_v5 = vadd.f32 %v1414_v39, %v686_v3  ;;  %v727_v6 = vadd.f32 %v1414_v39, %v726_v4  ;;  %v609_v7 = vpop.f32.mrf.mxu0  ;;  %v649_v8 = vpop.f32.mrf.mxu1 }
 0x103   : > { %892 = vst.msk [vmem:[%s1423_s29 + $0x74] sm:$0xf] %vm862_vm3, %v827_v2  ;;  %v610_v9 = vadd.f32 %v1414_v39, %v609_v7  ;;  %v650_v10 = vadd.f32 %v1414_v39, %v649_v8 }
 0x104   : > { %v779_v11 = vmax.f32 %v687_v5, 0.0  ;;  %v795_v12 = vmax.f32 %v727_v6, 0.0 }
 0x105   : > { %v748_v13 = vmax.f32 %v610_v9, 0.0  ;;  %v764_v14 = vmax.f32 %v650_v10, 0.0 }
 0x106   : > { %v843_v15 = vpack.c.bf16 %v779_v11, %v779_v11  ;;  %v859_v16 = vpack.c.bf16 %v795_v12, %v795_v12 }
 0x107   : > { %v812_v17 = vpack.c.bf16 %v748_v13, %v748_v13  ;;  %v828_v18 = vpack.c.bf16 %v764_v14, %v764_v14 }
 0x108   : > { %908 = vst.msk [vmem:[%s1423_s29 + $0xb4] sm:$0xf] %vm862_vm3, %v843_v15 }
 0x109   : > { %924 = vst.msk [vmem:[%s1423_s29 + $0xf4] sm:$0xf] %vm862_vm3, %v859_v16  ;;  %v689_v19 = vpop.f32.mrf.mxu2  ;;  %v729_v20 = vpop.f32.mrf.mxu3 }
 0x10a   : > { %877 = vst.msk [vmem:[%s1423_s29 + $0x38] sm:$0xf] %vm862_vm3, %v812_v17  ;;  %v690_v21 = vadd.f32 %v1414_v39, %v689_v19  ;;  %v730_v22 = vadd.f32 %v1414_v39, %v729_v20  ;;  %v611_v23 = vpop.f32.mrf.mxu0  ;;  %v651_v24 = vpop.f32.mrf.mxu1 }
 0x10b   : > { %893 = vst.msk [vmem:[%s1423_s29 + $0x78] sm:$0xf] %vm862_vm3, %v828_v18  ;;  %v612_v25 = vadd.f32 %v1414_v39, %v611_v23  ;;  %v652_v26 = vadd.f32 %v1414_v39, %v651_v24 }
 0x10c   : > { %v780_v27 = vmax.f32 %v690_v21, 0.0  ;;  %v796_v28 = vmax.f32 %v730_v22, 0.0 }
 0x10d   : > { %v749_v29 = vmax.f32 %v612_v25, 0.0  ;;  %v765_v30 = vmax.f32 %v652_v26, 0.0 }
 0x10e   : > { %v844_v31 = vpack.c.bf16 %v780_v27, %v780_v27  ;;  %v860_v32 = vpack.c.bf16 %v796_v28, %v796_v28 }
 0x10f   : > { %v813_v33 = vpack.c.bf16 %v749_v29, %v749_v29  ;;  %v829_v34 = vpack.c.bf16 %v765_v30, %v765_v30 }
 0x110   : > { %909 = vst.msk [vmem:[%s1423_s29 + $0xb8] sm:$0xf] %vm862_vm3, %v844_v31 }
 0x111   : > { %925 = vst.msk [vmem:[%s1423_s29 + $0xf8] sm:$0xf] %vm862_vm3, %v860_v32  ;;  %v691_v35 = vpop.f32.mrf.mxu2  ;;  %v731_v36 = vpop.f32.mrf.mxu3 }
 0x112   : > { %878 = vst.msk [vmem:[%s1423_s29 + $0x3c] sm:$0xf] %vm862_vm3, %v813_v33  ;;  %v692_v37 = vadd.f32 %v1414_v39, %v691_v35  ;;  %v732_v38 = vadd.f32 %v1414_v39, %v731_v36 }
 0x113   : > { %894 = vst.msk [vmem:[%s1423_s29 + $0x7c] sm:$0xf] %vm862_vm3, %v829_v34 }
 0x114   : > { %v781_v40 = vmax.f32 %v692_v37, 0.0  ;;  %v797_v41 = vmax.f32 %v732_v38, 0.0 }
 0x116   : > { %v845_v42 = vpack.c.bf16 %v781_v40, %v781_v40  ;;  %v861_v43 = vpack.c.bf16 %v797_v41, %v797_v41 }
 0x118   : > { %910 = vst.msk [vmem:[%s1423_s29 + $0xbc] sm:$0xf] %vm862_vm3, %v845_v42 }
 0x119   : > { %926 = vst.msk [vmem:[%s1423_s29 + $0xfc] sm:$0xf] %vm862_vm3, %v861_v43 }
 0x11a PF: > { %s13_s14 = sadd.s32 1, %s1290_s14   ;;  %s1628_s12 = smov %s1286_s13 }
 0x11b   : > { %p10_p5 = scmp.ge.s32.totalorder %s13_s14, 6   ;;  %s1629_s13 = smov %s1631_s15 }
 0x11d   :  { %12 = sbr.rel (!%p10_p5) target bundleno = 2 (0x2), region = 68 }

</bundles_post_ra>
